<compile_context>
chip_gen: v7x
topology: tpu7x:2x2x1
jax: 0.10.0
libtpu: 0.0.40
codegen_flags: <defaults>
</compile_context>

<pallas_src>
import jax
import jax.numpy as jnp
from jax.experimental import pallas as pl
from jax.experimental.pallas import tpu as pltpu

LANE = 128  # TPU vreg lane width


def _round_up(x, m):
    return ((x + m - 1) // m) * m


def mlp_decoder_kernel(x_ref, w1_ref, b1_ref, w2_ref, b2_ref, o_ref):
    """Fused  y = tanh(x @ W1 + b1) @ W2 + b2  on one (TILE_B, *) block.

    Matmuls run on the MXU with f32 accumulation; the bias add + tanh stay in
    f32 on the VPU/EUP (v5e-safe).  x is cast to the weight dtype *inside* the
    kernel (after the vld), so a bf16 MXU path costs no extra HBM pass.
    """
    x = x_ref[...].astype(w1_ref.dtype)
    h = jnp.dot(x, w1_ref[...], preferred_element_type=jnp.float32)
    h = jnp.tanh(h + b1_ref[...])              # f32 elementwise
    h = h.astype(w2_ref.dtype)                 # bf16 into 2nd MXU pass if enabled
    y = jnp.dot(h, w2_ref[...], preferred_element_type=jnp.float32)
    o_ref[...] = (y + b2_ref[...]).astype(o_ref.dtype)


def prepare_params(w1, b1, w2, b2, *, compute_dtype=jnp.float32):
    """One-time padding/cast of the decoder parameters.

    Hidden dim is zero-padded to the 128-lane vreg width (lane-dense VMEM
    intermediate; padded lanes contribute exactly zero).  Output dim is left
    unpadded so the kernel writes exactly (B, D_out) bytes to HBM.  Weights are
    optionally cast to bf16 for the MXU; biases stay f32.
    """
    D_in, D_hid = w1.shape
    D_out = w2.shape[1]
    H = _round_up(D_hid, LANE)

    w1p = jnp.zeros((D_in, H), compute_dtype).at[:, :D_hid].set(
        w1.astype(compute_dtype))
    b1p = jnp.zeros((1, H), jnp.float32).at[:, :D_hid].set(b1.reshape(1, -1))
    w2p = jnp.zeros((H, D_out), compute_dtype).at[:D_hid, :].set(
        w2.astype(compute_dtype))
    b2p = b2.reshape(1, D_out).astype(jnp.float32)
    return w1p, b1p, w2p, b2p


def message_decoder(x, w1p, b1p, w2p, b2p, *, tile_b=4096, grid_threshold=256):
    """MessageDecoder forward pass.

    x : (B, D_in); parameters come from prepare_params().  Returns (B, D_out)
    in x.dtype.
    """
    B, D_in = x.shape
    H = w1p.shape[1]
    D_out = w2p.shape[1]
    out_dtype = x.dtype

    w_item = jnp.dtype(w1p.dtype).itemsize
    x_item = jnp.dtype(x.dtype).itemsize
    o_item = jnp.dtype(out_dtype).itemsize
    cost = pl.CostEstimate(
        flops=2 * B * (D_in * H + H * D_out),
        transcendentals=B * H,
        bytes_accessed=(B * D_in * x_item + D_in * H * w_item
                        + H * D_out * w_item + (H + D_out) * 4
                        + B * D_out * o_item),
    )

    if B <= grid_threshold:
        # Small batch: one VMEM-resident invocation, no grid, no pipeline
        # machinery.  (Above the threshold we always grid so v7x's second
        # TensorCore gets work.)
        vmem = pl.BlockSpec(memory_space=pltpu.MemorySpace.VMEM)
        return pl.pallas_call(
            mlp_decoder_kernel,
            out_shape=jax.ShapeDtypeStruct((B, D_out), out_dtype),
            in_specs=[vmem, vmem, vmem, vmem, vmem],
            out_specs=vmem,
            cost_estimate=cost,
        )(x, w1p, b1p, w2p, b2p)

    # Gridded path: stream activations over the batch axis; weights/biases
    # stay VMEM-resident (constant index_map).  Guarantee >= 2 grid steps so
    # "parallel" can shard the batch across both v7x TensorCores.
    assert tile_b % 8 == 0, "tile_b must be a multiple of 8 (f32 sublanes)"
    tile = min(tile_b, _round_up(pl.cdiv(B, 2), 8))
    return pl.pallas_call(
        mlp_decoder_kernel,
        out_shape=jax.ShapeDtypeStruct((B, D_out), out_dtype),
        grid=(pl.cdiv(B, tile),),
        in_specs=[
            pl.BlockSpec((tile, D_in), lambda i: (i, 0)),
            pl.BlockSpec((D_in, H), lambda i: (0, 0)),
            pl.BlockSpec((1, H), lambda i: (0, 0)),
            pl.BlockSpec((H, D_out), lambda i: (0, 0)),
            pl.BlockSpec((1, D_out), lambda i: (0, 0)),
        ],
        out_specs=pl.BlockSpec((tile, D_out), lambda i: (i, 0)),
        compiler_params=pltpu.CompilerParams(
            dimension_semantics=("parallel",),
            vmem_limit_bytes=64 * 1024 * 1024),
        cost_estimate=cost,
    )(x, w1p, b1p, w2p, b2p)


def init_params(key, input_dim, hidden_dim, output_dim):
    """Deterministic init matching torch.nn.Linear (weights stored transposed
    so the kernel does x @ W directly)."""
    k1, k2, k3, k4 = jax.random.split(key, 4)
    s1 = 1.0 / jnp.sqrt(input_dim)
    s2 = 1.0 / jnp.sqrt(hidden_dim)
    w1 = jax.random.uniform(k1, (input_dim, hidden_dim), jnp.float32, -s1, s1)
    b1 = jax.random.uniform(k2, (hidden_dim,), jnp.float32, -s1, s1)
    w2 = jax.random.uniform(k3, (hidden_dim, output_dim), jnp.float32, -s2, s2)
    b2 = jax.random.uniform(k4, (output_dim,), jnp.float32, -s2, s2)
    return w1, b1, w2, b2


if __name__ == "__main__":
    # args = {'input_dim': 32, 'hidden_dim': 64, 'output_dim': 16}
    input_dim, hidden_dim, output_dim = 32, 64, 16

    key = jax.random.PRNGKey(0)
    kx, kp = jax.random.split(key)
    w1, b1, w2, b2 = init_params(kp, input_dim, hidden_dim, output_dim)

    # Parameters are padded/cast ONCE (hoisted out of the per-call path).
    params_f32 = prepare_params(w1, b1, w2, b2)
    params_bf16 = prepare_params(w1, b1, w2, b2, compute_dtype=jnp.bfloat16)

    # --- small batch: single-block (no-grid) f32 path ---
    batch = 8
    x = jax.random.normal(kx, (batch, input_dim), jnp.float32)
    ref = jnp.tanh(x @ w1 + b1) @ w2 + b2

    out = jax.block_until_ready(message_decoder(x, *params_f32))
    assert out.shape == (batch, output_dim)
    assert jnp.allclose(out, ref, atol=1e-5, rtol=1e-5)

    # --- bf16 MXU weights (v6e/v7x fast path); x cast in-kernel, f32 acc ---
    out_bf16 = jax.block_until_ready(message_decoder(x, *params_bf16))
    assert out_bf16.shape == (batch, output_dim)
    assert jnp.allclose(out_bf16, ref, atol=5e-2, rtol=5e-2)

    # --- batch-tiled (gridded) path with resident weights ---
    batch2 = 64
    x2 = jax.random.normal(kx, (batch2, input_dim), jnp.float32)
    ref2 = jnp.tanh(x2 @ w1 + b1) @ w2 + b2
    out2 = jax.block_until_ready(
        message_decoder(x2, *params_f32, tile_b=16, grid_threshold=16))
    assert out2.shape == (batch2, output_dim)
    assert jnp.allclose(out2, ref2, atol=1e-5, rtol=1e-5)

    print("KERNEL_OK")
</pallas_src>

<mosaic_0001>
module attributes {stable_mosaic.version = 11 : i64} {
  func.func @mlp_decoder_kernel(%arg0: memref<8x32xf32, #tpu.memory_space<vmem>>, %arg1: memref<32x128xf32, #tpu.memory_space<vmem>>, %arg2: memref<1x128xf32, #tpu.memory_space<vmem>>, %arg3: memref<128x16xf32, #tpu.memory_space<vmem>>, %arg4: memref<1x16xf32, #tpu.memory_space<vmem>>, %arg5: memref<8x16xf32, #tpu.memory_space<vmem>>) attributes {dimension_semantics = [], scalar_prefetch = 0 : i64, scratch_operands = 0 : i64, tpu.core_type = #tpu.core_type<tc>} {
    %c0 = arith.constant 0 : index
    %c0_0 = arith.constant 0 : index
    %0 = vector.load %arg0[%c0, %c0_0] : memref<8x32xf32, #tpu.memory_space<vmem>>, vector<8x32xf32>
    %c0_1 = arith.constant 0 : index
    %c0_2 = arith.constant 0 : index
    %1 = vector.load %arg1[%c0_1, %c0_2] : memref<32x128xf32, #tpu.memory_space<vmem>>, vector<32x128xf32>
    %cst = arith.constant dense<0.000000e+00> : vector<8x128xf32>
    %2 = tpu.matmul %0, %1, %cst {dimension_numbers = #tpu.dot_dimension_numbers<[1], [0], [0], [1], [0, 0, 1, 1], [], []>} : vector<8x32xf32>, vector<32x128xf32>, vector<8x128xf32> -> vector<8x128xf32>
    %c0_3 = arith.constant 0 : index
    %c0_4 = arith.constant 0 : index
    %3 = vector.load %arg2[%c0_3, %c0_4] : memref<1x128xf32, #tpu.memory_space<vmem>>, vector<1x128xf32>
    %4 = vector.broadcast %3 : vector<1x128xf32> to vector<8x128xf32>
    %5 = arith.addf %2, %4 : vector<8x128xf32>
    %6 = math.tanh %5 : vector<8x128xf32>
    %c0_5 = arith.constant 0 : index
    %c0_6 = arith.constant 0 : index
    %7 = vector.load %arg3[%c0_5, %c0_6] : memref<128x16xf32, #tpu.memory_space<vmem>>, vector<128x16xf32>
    %cst_7 = arith.constant dense<0.000000e+00> : vector<8x16xf32>
    %8 = tpu.matmul %6, %7, %cst_7 {dimension_numbers = #tpu.dot_dimension_numbers<[1], [0], [0], [1], [0, 0, 1, 1], [], []>} : vector<8x128xf32>, vector<128x16xf32>, vector<8x16xf32> -> vector<8x16xf32>
    %c0_8 = arith.constant 0 : index
    %c0_9 = arith.constant 0 : index
    %9 = vector.load %arg4[%c0_8, %c0_9] : memref<1x16xf32, #tpu.memory_space<vmem>>, vector<1x16xf32>
    %10 = vector.broadcast %9 : vector<1x16xf32> to vector<8x16xf32>
    %11 = arith.addf %8, %10 : vector<8x16xf32>
    %c0_10 = arith.constant 0 : index
    %c0_11 = arith.constant 0 : index
    %12 = vector.load %arg5[%c0_10, %c0_11] : memref<8x16xf32, #tpu.memory_space<vmem>>, vector<8x16xf32>
    tpu.vector_store %arg5[%c0_10, %c0_11], %11 {strides = array<i32>} : memref<8x16xf32, #tpu.memory_space<vmem>>, vector<8x16xf32>,
    return
  }
}

</mosaic_0001>

<bundles_post_ra>
// kernel: tpu_custom_call.1
= control target key start
LH: loop header
LB: loop body
LE: loop exit
PB: predicated region body
PF: predicated region fallthrough
CT: control target
= control target key end

     0   :  { %v348_v3 = vmov 0.0|0.0   ;;  %vm349_vm0 = vmmov 0   ;;  %v350_v6 = vmov 0.0   ;;  %s463_s0 = inlined_call_operand.vmem [shape: f32[8,32], index: 0, kind: input, shape index: {}]   ;;  %s464_s1 = inlined_call_operand.vmem [shape: f32[32,128], index: 1, kind: input, shape index: {}]   ;;  %s465_s2 = inlined_call_operand.vmem [shape: f32[1,128], index: 2, kind: input, shape index: {}]   ;;  %s466_s3 = inlined_call_operand.vmem [shape: f32[128,16], index: 3, kind: input, shape index: {}]   ;;  %s467_s4 = inlined_call_operand.vmem [shape: f32[1,16], index: 4, kind: input, shape index: {}]   ;;  %s468_s5 = inlined_call_operand.hbm [shape: f32[8,16], index: 5, kind: output, shape index: {}]  }
   0x1   :  { %v22_v0 = vld [vmem:[%s464_s1] sm:$0xff]  ;;  %v23_v1 = vld [vmem:[%s464_s1 + $0x8] sm:$0xff]  ;;  %v24_v2 = vld [vmem:[%s464_s1 + $0x10] sm:$0xff]  ;;  %288 = vmatprep.subr.bf16.mxu0 %v348_v3  ;;  %250 = vmatprep.mubr.msk.f32.mxu0 %vm349_vm0, %v350_v6 }
   0x2   :  { %v289_v4 = vpack.c.bf16 %v23_v1, %v22_v0  ;;  %v25_v5 = vld [vmem:[%s464_s1 + $0x18] sm:$0xff]  ;;  %v108_v7 = vld [vmem:[%s466_s3] sm:$0xff]  ;;  %294 = vmatprep.subr.bf16.mxu1 %v348_v3  ;;  %v109_v8 = vld [vmem:[%s466_s3 + $0x8] sm:$0xff]  ;;  %285 = vmatprep.mubr.msk.f32.mxu1 %vm349_vm0, %v350_v6 }
   0x3   :  { %v110_v9 = vld [vmem:[%s466_s3 + $0x10] sm:$0xff]  ;;  %v111_v10 = vld [vmem:[%s466_s3 + $0x18] sm:$0xff]  ;;  %v292_v11 = vpack.c.bf16 %v25_v5, %v24_v2  ;;  %v295_v12 = vpack.c.bf16 %v109_v8, %v108_v7 }
   0x4   :  { %290 = vmatpush3.bf16.msra.mxu0 %v289_v4  ;;  %v298_v13 = vpack.c.bf16 %v111_v10, %v110_v9 }
   0x5   :  { %291 = vmatprep.subr.bf16.mxu0 %v348_v3  ;;  %296 = vmatpush3.bf16.msra.mxu1 %v295_v12 }
   0x6   :  { %10 = vsyncpa [#allocation3], 0  ;;  %297 = vmatprep.subr.bf16.mxu1 %v348_v3  ;;  %v112_v14 = vld [vmem:[%s466_s3 + $0x20] sm:$0xff]  ;;  %v113_v15 = vld [vmem:[%s466_s3 + $0x28] sm:$0xff]  ;;  %vm33_vm1 = vcmask 261120   ;;  %s351_s11 = smov [#allocation2]  }
   0x7   :  { %v21_v16 = vld [vmem:[%s463_s0] sm:$0xff]  ;;  %v301_v17 = vpack.c.bf16 %v113_v15, %v112_v14  ;;  %v114_v18 = vld [vmem:[%s466_s3 + $0x30] sm:$0xff]  ;;  %v115_v19 = vld [vmem:[%s466_s3 + $0x38] sm:$0xff]  ;;  %vm201_vm2 = vcmask 130048  }
   0x8   :  { %293 = vmatpush3.bf16.msra.mxu0 %v292_v11  ;;  %v304_v20 = vpack.c.bf16 %v115_v19, %v114_v18  ;;  %v116_v21 = vld [vmem:[%s466_s3 + $0x40] sm:$0xff]  ;;  %v117_v22 = vld [vmem:[%s466_s3 + $0x48] sm:$0xff]  ;;  %v118_v24 = vld [vmem:[%s466_s3 + $0x50] sm:$0xff] }
   0x9   :  { %299 = vmatpush3.bf16.msra.mxu1 %v298_v13  ;;  %v307_v23 = vpack.c.bf16 %v117_v22, %v116_v21  ;;  %v119_v25 = vld [vmem:[%s466_s3 + $0x58] sm:$0xff]  ;;  %v120_v27 = vld [vmem:[%s466_s3 + $0x60] sm:$0xff]  ;;  %v121_v28 = vld [vmem:[%s466_s3 + $0x68] sm:$0xff] }
   0xa   :  { %300 = vmatprep.subr.bf16.mxu1 %v348_v3  ;;  %v310_v26 = vpack.c.bf16 %v119_v25, %v118_v24  ;;  %v313_v29 = vpack.c.bf16 %v121_v28, %v120_v27  ;;  %v122_v30 = vld [vmem:[%s466_s3 + $0x70] sm:$0xff]  ;;  %v123_v31 = vld [vmem:[%s466_s3 + $0x78] sm:$0xff]  ;;  %v217_v33 = vld [vmem:[%s465_s2] ss:$0 sm:$0xff]  ;;  %s209_s3 = sshll.u32 %s351_s11, 4  ;;  %s210_s3 = int_to_ptr.vmem [resolvable:$true] %s209_s3 }
   0xb   :  { %251 = vmatmul.mubr.msk.f32.vlgmr.msra.gmra.mrb[0].mxu0 %vm33_vm1, %v21_v16  ;;  %v316_v32 = vpack.c.bf16 %v123_v31, %v122_v30  ;;  %v219_v38 = vld [vmem:[%s467_s4] ss:$0 sm:$0xff]  ;;  %s324_s12 = scalar_lea.vmem %s210_s3, 128  ;;  %p329_p1 = scmp.lt.s32.totalorder %s210_s3, %s210_s3 }
   0xc   :  { %p325_p0 = scmp.ne.s32.totalorder %s210_s3, %s324_s12  ;;  %p330_p2 = scmp.lt.s32.totalorder %s324_s12, %s324_s12 }
   0xd   :  { %302 = vmatpush3.bf16.msra.mxu1 %v301_v17 }
   0xe   :  { %303 = vmatprep.subr.bf16.mxu1 %v348_v3  ;;  %p331_p3 = por %p330_p2, %p329_p1 }
  0x10   :  { %p332_p4 = pnand %p331_p3, %p325_p0 }
  0x11   :  { %305 = vmatpush3.bf16.msra.mxu1 %v304_v20 }
  0x12   :  { %306 = vmatprep.subr.bf16.mxu1 %v348_v3 }
  0x15   :  { %308 = vmatpush3.bf16.msra.mxu1 %v307_v23 }
  0x16   :  { %309 = vmatprep.subr.bf16.mxu1 %v348_v3 }
  0x19   :  { %311 = vmatpush3.bf16.msra.mxu1 %v310_v26 }
  0x1a   :  { %312 = vmatprep.subr.bf16.mxu1 %v348_v3 }
  0x1d   :  { %314 = vmatpush3.bf16.msra.mxu1 %v313_v29 }
  0x1e   :  { %315 = vmatprep.subr.bf16.mxu1 %v348_v3 }
  0x21   :  { %317 = vmatpush3.bf16.msra.mxu1 %v316_v32 }
  0xde   :  { %v103_v34 = vpop.f32.mrb[0].mxu0 }
  0xdf   :  { %v104_v35 = vadd.f32 %v217_v33, %v103_v34  ;;  %v252_v36 = vpop.f32.mrb[1].mxu0 }
  0xe1   :  { %322 = vtanh.f32 %v104_v35 }
  0xeb   :  { %v323_v37 = vpop.eup %322 }
  0xec   :  { %286 = vmatmul.mubr.f32.vlgmr.msra.gmra.mrb[0].mxu1 %v323_v37 }
 0x1bf   :  { %v197_v39 = vpop.f32.mrb[0].mxu1 }
 0x1c0   :  { %v198_v40 = vadd.f32 %v219_v38, %v197_v39  ;;  %v287_v41 = vpop.f32.mrb[1].mxu1 }
 0x1c2   :  { %202 = vst.msk [vmem:[#allocation2] sm:$0xff] %vm201_vm2, %v198_v40 }
 0x1c3   :  { %335 = shalt.err (!%p332_p4)
}
 0x1c4   :  { %s336_s14 = scalar_lea.hbm %s468_s5, 128 }
 0x1c5   :  { %p337_p5 = scmp.ne.s32.totalorder %s468_s5, %s336_s14  ;;  %p340_p6 = scmp.lt.u32.totalorder %s336_s14, %s468_s5 }
 0x1c7   :  { %p342_p7 = pnand %p340_p6, %p337_p5 }
 0x1c9   :  { %345 = shalt.err (!%p342_p7)
}
 0x1ca   :  { %212 = dma.vmem_to_hbm [thread:$0]  %s210_s3, 128, %s468_s5, [#allocation3]  }
 0x1cb   :  { %346 = dma.done.wait [#allocation3], 128  }
 0x1cc   :  { %347 = vsyncadd [#allocation3], 4294967168 }
 0x1cd   :  { %216 = vsyncpa [#allocation3], 1 }

</bundles_post_ra>
